<compile_context>
chip_gen: v7x
topology: tpu7x:2x2x1
jax: 0.10.0
libtpu: 0.0.40
codegen_flags: <defaults>
</compile_context>

<pallas_src>
from typing import Any, NamedTuple

import jax
import jax.numpy as jnp
from jax import lax
from jax.experimental import pallas as pl
from jax.experimental.pallas import tpu as pltpu


def _round_up(x: int, m: int) -> int:
    return ((x + m - 1) // m) * m


def _default_tiles() -> tuple[int, int, int]:
    """(tm, tn, tk) defaults per TPU generation (all fit default scoped VMEM)."""
    try:
        kind = jax.devices()[0].device_kind.lower()
    except Exception:  # pragma: no cover - CPU/interpret fallback
        kind = ""
    if "v5" in kind:
        return 512, 512, 1024       # ~6 MiB double-buffered, intensity 256
    if "v6" in kind or "trillium" in kind:
        return 1024, 1024, 512      # ~12 MiB double-buffered, intensity 512
    if "v7" in kind:
        return 768, 768, 512        # ~7.5 MiB double-buffered (64 MiB VMEM chip)
    return 512, 512, 512            # conservative fallback


class ComplexLinearParams(NamedTuple):
    """Pre-packed weights: stack/cast/pad done ONCE, not per forward call."""
    w2: jax.Array          # (2, Kp, Np) in mxu_dtype   (plane 0 = real, 1 = imag)
    b2: jax.Array          # (2, 1,  Np) float32
    in_features: int
    out_features: int
    tn: int
    tk: int
    mxu_dtype: Any


def prepare_complex_linear_params(w_real, b_real, w_imag, b_imag, *,
                                  tn=None, tk=None, mxu_dtype=jnp.bfloat16):
    """One-time weight packing. w_* are pre-transposed (in_features, out_features)."""
    K, N = w_real.shape
    _, d_tn, d_tk = _default_tiles()
    tn = d_tn if tn is None else tn
    tk = d_tk if tk is None else tk
    # Clamp to the problem size while keeping lane-dense (>=128-wide) tiles.
    tn = min(tn, max(_round_up(N, 128), 128))
    tk = min(tk, max(_round_up(K, 128), 128))
    Kp = _round_up(K, tk)
    Np = _round_up(N, tn)

    w2 = jnp.stack([w_real, w_imag]).astype(mxu_dtype)
    w2 = jnp.pad(w2, ((0, 0), (0, Kp - K), (0, Np - N)))
    b2 = jnp.stack([b_real, b_imag]).astype(jnp.float32).reshape(2, 1, N)
    b2 = jnp.pad(b2, ((0, 0), (0, 0), (0, Np - N)))
    return ComplexLinearParams(w2=w2, b2=b2, in_features=K, out_features=N,
                               tn=tn, tk=tk, mxu_dtype=mxu_dtype)


def _complex_linear_kernel(x_ref, w_ref, b_ref, o_ref):
    # x_ref: (tm, tk), w_ref: (tk, tn), b_ref: (1, tn) f32, o_ref: (tm, tn) f32.
    # o_ref's index_map ignores k, so the block stays resident in VMEM across
    # the whole K axis and serves as the accumulator (no scratch needed).
    k = pl.program_id(3)
    contrib = jnp.dot(x_ref[...], w_ref[...], preferred_element_type=jnp.float32)

    @pl.when(k == 0)
    def _():
        o_ref[...] = contrib + b_ref[...]          # bias folded into first step

    @pl.when(k > 0)
    def _():
        o_ref[...] += contrib


def complex_linear_planar(x_real, x_imag, params: ComplexLinearParams, *, tm=None):
    """Planar fast path: f32 (M,K) real/imag planes in, f32 (M,N) planes out."""
    M, K = x_real.shape
    assert K == params.in_features
    N = params.out_features
    tn, tk = params.tn, params.tk
    Kp, Np = params.w2.shape[1], params.w2.shape[2]

    d_tm, _, _ = _default_tiles()
    tm = d_tm if tm is None else tm
    # bf16 packs 16 rows per sublane-packed vreg; 16 also satisfies the 8-row rule.
    tm = min(tm, _round_up(M, 16))
    Mp = _round_up(M, tm)

    # Only x is touched per call (zero padding contributes nothing to the dot).
    x2 = jnp.stack([x_real, x_imag]).astype(params.mxu_dtype)
    x2 = jnp.pad(x2, ((0, 0), (0, Mp - M), (0, Kp - K)))

    grid = (2, Mp // tm, Np // tn, Kp // tk)
    elem_bytes = jnp.dtype(params.mxu_dtype).itemsize

    out = pl.pallas_call(
        _complex_linear_kernel,
        out_shape=jax.ShapeDtypeStruct((2, Mp, Np), jnp.float32),
        grid_spec=pltpu.PrefetchScalarGridSpec(
            num_scalar_prefetch=0,
            grid=grid,
            in_specs=[
                pl.BlockSpec((None, tm, tk), lambda p, i, j, k: (p, i, k)),
                pl.BlockSpec((None, tk, tn), lambda p, i, j, k: (p, k, j)),
                pl.BlockSpec((None, 1, tn), lambda p, i, j, k: (p, 0, j)),
            ],
            out_specs=pl.BlockSpec((None, tm, tn), lambda p, i, j, k: (p, i, j)),
        ),
        compiler_params=pltpu.CompilerParams(
            dimension_semantics=("parallel", "parallel", "parallel", "arbitrary"),
        ),
        cost_estimate=pl.CostEstimate(
            flops=2 * 2 * Mp * Kp * Np,
            bytes_accessed=2 * (Mp * Kp + Kp * Np) * elem_bytes + 2 * Mp * Np * 4,
            transcendentals=0,
        ),
    )(x2, params.w2, params.b2)

    return out[0, :M, :N], out[1, :M, :N]


def complex_linear(x, params: ComplexLinearParams, *, tm=None):
    """complex64 (M, in) -> complex64 (M, out); matches the PyTorch module."""
    # TODO(synk): fuse the complex64 de/re-interleave into the kernel
    # (bitcast + strided lane slices) to avoid these extra HBM passes.
    xr = jnp.real(x).astype(jnp.float32)
    xi = jnp.imag(x).astype(jnp.float32)
    yr, yi = complex_linear_planar(xr, xi, params, tm=tm)
    return lax.complex(yr, yi)


def init_complex_linear_params(key, in_features, out_features):
    """nn.Linear default init: U(-1/sqrt(in), 1/sqrt(in)); weights stored (in, out)."""
    k1, k2, k3, k4 = jax.random.split(key, 4)
    bound = 1.0 / jnp.sqrt(jnp.float32(in_features))
    w_real = jax.random.uniform(k1, (in_features, out_features), jnp.float32, -bound, bound)
    b_real = jax.random.uniform(k2, (out_features,), jnp.float32, -bound, bound)
    w_imag = jax.random.uniform(k3, (in_features, out_features), jnp.float32, -bound, bound)
    b_imag = jax.random.uniform(k4, (out_features,), jnp.float32, -bound, bound)
    return w_real, b_real, w_imag, b_imag


if __name__ == "__main__":
    key = jax.random.PRNGKey(0)
    k_param, k_xr, k_xi = jax.random.split(key, 3)

    # Small, deliberately non-aligned shapes so padding, multi-step K
    # accumulation and multi-tile M/N paths are all exercised.
    B, IN, OUT = 24, 300, 200
    w_real, b_real, w_imag, b_imag = init_complex_linear_params(k_param, IN, OUT)

    x_real = jax.random.normal(k_xr, (B, IN), jnp.float32)
    x_imag = jax.random.normal(k_xi, (B, IN), jnp.float32)
    x = lax.complex(x_real, x_imag)  # complex64

    # Small tiles purely to force a (2, 2, 2, 3) grid for the test; at real
    # Linear sizes the per-chip defaults from _default_tiles() are used.
    params_bf16 = prepare_complex_linear_params(
        w_real, b_real, w_imag, b_imag, tn=128, tk=128)
    y = jax.block_until_ready(complex_linear(x, params_bf16, tm=16))

    # Reference 1: same bf16-operand / f32-accumulate recipe (tight check).
    def ref_dot(a, w):
        return jnp.dot(a.astype(jnp.bfloat16), w.astype(jnp.bfloat16),
                       preferred_element_type=jnp.float32)
    y_ref_bf16 = lax.complex(ref_dot(x_real, w_real) + b_real,
                             ref_dot(x_imag, w_imag) + b_imag)
    # Reference 2: full f32 math (loose check, bounds the bf16 cast error).
    y_ref_f32 = lax.complex(x_real @ w_real + b_real, x_imag @ w_imag + b_imag)

    assert y.shape == (B, OUT) and y.dtype == jnp.complex64
    assert jnp.allclose(y, y_ref_bf16, atol=1e-3, rtol=1e-3)
    assert jnp.allclose(y, y_ref_f32, atol=5e-2, rtol=5e-2)

    # Strict-parity opt-in (f32 MXU operands) via the planar fast path.
    params_f32 = prepare_complex_linear_params(
        w_real, b_real, w_imag, b_imag, tn=128, tk=128, mxu_dtype=jnp.float32)
    yr, yi = complex_linear_planar(x_real, x_imag, params_f32, tm=16)
    yr, yi = jax.block_until_ready((yr, yi))
    assert jnp.allclose(yr, x_real @ w_real + b_real, atol=2e-2, rtol=2e-2)
    assert jnp.allclose(yi, x_imag @ w_imag + b_imag, atol=2e-2, rtol=2e-2)

    print("KERNEL_OK")
</pallas_src>

<mosaic_0001>
module attributes {stable_mosaic.version = 11 : i64} {
  func.func @_complex_linear_kernel(%arg0: i32, %arg1: i32, %arg2: i32, %arg3: i32, %arg4: memref<1x16x128xbf16, #tpu.memory_space<vmem>>, %arg5: memref<1x128x128xbf16, #tpu.memory_space<vmem>>, %arg6: memref<1x1x128xf32, #tpu.memory_space<vmem>>, %arg7: memref<1x16x128xf32, #tpu.memory_space<vmem>>) attributes {dimension_semantics = [#tpu.dimension_semantics<parallel>, #tpu.dimension_semantics<parallel>, #tpu.dimension_semantics<parallel>, #tpu.dimension_semantics<arbitrary>], iteration_bounds = array<i64: 2, 2, 2, 3>, scalar_prefetch = 0 : i64, scratch_operands = 0 : i64, tpu.core_type = #tpu.core_type<tc>, window_params = [{transform_indices = @transform_0, window_bounds = array<i64: 1, 16, 128>}, {transform_indices = @transform_1, window_bounds = array<i64: 1, 128, 128>}, {transform_indices = @transform_2, window_bounds = array<i64: 1, 1, 128>}, {transform_indices = @transform_3, window_bounds = array<i64: 1, 16, 128>}]} {
    %c0 = arith.constant 0 : index
    %c0_0 = arith.constant 0 : index
    %c0_1 = arith.constant 0 : index
    %0 = vector.load %arg4[%c0, %c0_0, %c0_1] : memref<1x16x128xbf16, #tpu.memory_space<vmem>>, vector<1x16x128xbf16>
    %1 = vector.shape_cast %0 : vector<1x16x128xbf16> to vector<16x128xbf16>
    %c0_2 = arith.constant 0 : index
    %c0_3 = arith.constant 0 : index
    %c0_4 = arith.constant 0 : index
    %2 = vector.load %arg5[%c0_2, %c0_3, %c0_4] : memref<1x128x128xbf16, #tpu.memory_space<vmem>>, vector<1x128x128xbf16>
    %3 = vector.shape_cast %2 : vector<1x128x128xbf16> to vector<128x128xbf16>
    %cst = arith.constant dense<0.000000e+00> : vector<16x128xf32>
    %4 = tpu.matmul %1, %3, %cst {dimension_numbers = #tpu.dot_dimension_numbers<[1], [0], [0], [1], [0, 0, 1, 1], [], []>} : vector<16x128xbf16>, vector<128x128xbf16>, vector<16x128xf32> -> vector<16x128xf32>
    %c0_i32 = arith.constant 0 : i32
    %5 = arith.cmpi eq, %arg3, %c0_i32 : i32
    %6 = arith.extui %5 : i1 to i32
    %c0_i32_5 = arith.constant 0 : i32
    %7 = arith.cmpi ne, %6, %c0_i32_5 : i32
    scf.if %7 {
      %c0_8 = arith.constant 0 : index
      %c0_9 = arith.constant 0 : index
      %c0_10 = arith.constant 0 : index
      %11 = vector.load %arg6[%c0_8, %c0_9, %c0_10] : memref<1x1x128xf32, #tpu.memory_space<vmem>>, vector<1x1x128xf32>
      %12 = vector.shape_cast %11 : vector<1x1x128xf32> to vector<1x128xf32>
      %13 = vector.broadcast %12 : vector<1x128xf32> to vector<16x128xf32>
      %14 = arith.addf %4, %13 : vector<16x128xf32>
      %c0_11 = arith.constant 0 : index
      %c0_12 = arith.constant 0 : index
      %c0_13 = arith.constant 0 : index
      %15 = vector.load %arg7[%c0_11, %c0_12, %c0_13] : memref<1x16x128xf32, #tpu.memory_space<vmem>>, vector<1x16x128xf32>
      %16 = vector.shape_cast %15 : vector<1x16x128xf32> to vector<16x128xf32>
      %17 = vector.shape_cast %14 : vector<16x128xf32> to vector<1x16x128xf32>
      tpu.vector_store %arg7[%c0_11, %c0_12, %c0_13], %17 {strides = array<i32>} : memref<1x16x128xf32, #tpu.memory_space<vmem>>, vector<1x16x128xf32>,
    } else {
    }
    %c0_i32_6 = arith.constant 0 : i32
    %8 = arith.cmpi sgt, %arg3, %c0_i32_6 : i32
    %9 = arith.extui %8 : i1 to i32
    %c0_i32_7 = arith.constant 0 : i32
    %10 = arith.cmpi ne, %9, %c0_i32_7 : i32
    scf.if %10 {
      %c0_8 = arith.constant 0 : index
      %c0_9 = arith.constant 0 : index
      %c0_10 = arith.constant 0 : index
      %11 = vector.load %arg7[%c0_8, %c0_9, %c0_10] : memref<1x16x128xf32, #tpu.memory_space<vmem>>, vector<1x16x128xf32>
      %12 = vector.shape_cast %11 : vector<1x16x128xf32> to vector<16x128xf32>
      %13 = arith.addf %12, %4 : vector<16x128xf32>
      %c0_11 = arith.constant 0 : index
      %c0_12 = arith.constant 0 : index
      %c0_13 = arith.constant 0 : index
      %14 = vector.load %arg7[%c0_11, %c0_12, %c0_13] : memref<1x16x128xf32, #tpu.memory_space<vmem>>, vector<1x16x128xf32>
      %15 = vector.shape_cast %14 : vector<1x16x128xf32> to vector<16x128xf32>
      %16 = vector.shape_cast %13 : vector<16x128xf32> to vector<1x16x128xf32>
      tpu.vector_store %arg7[%c0_11, %c0_12, %c0_13], %16 {strides = array<i32>} : memref<1x16x128xf32, #tpu.memory_space<vmem>>, vector<1x16x128xf32>,
    } else {
    }
    return
  }
  func.func @transform_0(%arg0: i32, %arg1: i32, %arg2: i32, %arg3: i32) -> (i32, i32, i32) {
    %c0_i32 = arith.constant 0 : i32
    return %arg0, %arg1, %arg3 : i32, i32, i32
  }
  func.func @transform_1(%arg0: i32, %arg1: i32, %arg2: i32, %arg3: i32) -> (i32, i32, i32) {
    %c0_i32 = arith.constant 0 : i32
    return %arg0, %arg3, %arg2 : i32, i32, i32
  }
  func.func @transform_2(%arg0: i32, %arg1: i32, %arg2: i32, %arg3: i32) -> (i32, i32, i32) {
    %c0_i32 = arith.constant 0 : i32
    %c0_i32_0 = arith.constant 0 : i32
    return %arg0, %c0_i32, %arg2 : i32, i32, i32
  }
  func.func @transform_3(%arg0: i32, %arg1: i32, %arg2: i32, %arg3: i32) -> (i32, i32, i32) {
    %c0_i32 = arith.constant 0 : i32
    return %arg0, %arg1, %arg2 : i32, i32, i32
  }
}

</mosaic_0001>

<bundles_post_ra>
// kernel: tpu_custom_call.1
= control target key start
LH: loop header
LB: loop body
LE: loop exit
PB: predicated region body
PF: predicated region fallthrough
CT: control target
= control target key end

     0   :  { %s1594_s0 = inlined_call_operand.hbm [shape: bf16[2,32,384], index: 0, kind: input, shape index: {}]   ;;  %s1595_s1 = inlined_call_operand.hbm [shape: bf16[2,384,256], index: 1, kind: input, shape index: {}]   ;;  %s1596_s2 = inlined_call_operand.vmem [shape: f32[2,1,256], index: 2, kind: input, shape index: {}]   ;;  %s1597_s3 = inlined_call_operand.hbm [shape: f32[2,32,256], index: 3, kind: output, shape index: {}]  }
   0x1   :  { %1623 = sst [smem:[#allocation26_spill]] %s1594_s0 }
   0x2   :  { %1624 = sst [smem:[#allocation27_spill]] %s1595_s1 }
   0x3   :  { %1625 = sst [smem:[#allocation28_spill]] %s1596_s2 }
   0x4   :  { %1626 = sst [smem:[#allocation29_spill]] %s1597_s3 }
   0x5   :  { %8 = vsyncpa [#allocation3], 0 }
   0x6   :  { %10 = vsyncpa [#allocation3 + $0x1], 0 }
   0x7   :  { %11 = vsyncpa [#allocation6], 0 }
   0x8   :  { %13 = vsyncpa [#allocation6 + $0x1], 0 }
   0x9   :  { %14 = vsyncpa [#allocation4], 0 }
   0xa   :  { %16 = vsyncpa [#allocation4 + $0x1], 0  ;;  %s1136_s12 = smov 0   ;;  %s1138_s13 = smov 0  }
   0xb   :  { %s1140_s14 = smov 0   ;;  %s1142_s15 = smov 0  }
   0xc   :  { %s1144_s16 = smov 0   ;;  %s1146_s17 = smov 0  }
   0xd   :  { %s1148_s18 = smov 0   ;;  %s1150_s19 = smov 0  }
   0xe   :  { %s1152_s20 = smov 0   ;;  %s1154_s21 = smov 0  }
   0xf   :  { %s1156_s22 = smov 0   ;;  %s1158_s23 = smov 0  }
  0x10   :  { %s1160_s24 = smov 0   ;;  %s1162_s25 = smov 0  }
  0x11   :  { %s1164_s26 = smov 0   ;;  %s1166_s27 = smov 0  }
  0x12   :  { %s1168_s28 = smov 0   ;;  %s1170_s29 = smov 0  }
  0x13 LB: > { %1627 = sst [smem:[#allocation11_spill]] %s1034_s12  ;;  %s609_s30 = sadd.s32 4294967295, %s1102_s29   ;;  %s1102_s29 = sphi %s1170_s29, %s22_s29   ;;  %s1098_s28 = sphi %s1168_s28, %s1707_s28   ;;  %s1094_s27 = sphi %s1166_s27, %s1706_s27   ;;  %s1090_s26 = sphi %s1164_s26, %s1705_s26   ;;  %s1086_s25 = sphi %s1162_s25, %s1691_s25   ;;  %s1082_s24 = sphi %s1160_s24, %s1704_s24   ;;  %s1078_s23 = sphi %s1158_s23, %s1690_s23   ;;  %s1074_s22 = sphi %s1156_s22, %s1703_s22   ;;  %s1070_s21 = sphi %s1154_s21, %s1689_s21   ;;  %s1066_s20 = sphi %s1152_s20, %s1702_s20   ;;  %s1062_s19 = sphi %s1150_s19, %s1701_s19   ;;  %s1058_s18 = sphi %s1148_s18, %s1688_s18   ;;  %s1054_s17 = sphi %s1146_s17, %s1700_s17   ;;  %s1050_s16 = sphi %s1144_s16, %s1699_s16   ;;  %s1046_s15 = sphi %s1142_s15, %s1698_s15   ;;  %s1042_s14 = sphi %s1140_s14, %s1697_s14   ;;  %s1038_s13 = sphi %s1138_s13, %s1696_s13   ;;  %s1034_s12 = sphi %s1136_s12, %s1694_s12  }
  0x14   : > { %1628 = sst [smem:[#allocation12_spill]] %s1062_s19  ;;  %s37_s4 = sadd.s32 1, %s1086_s25 }
  0x15   : > { %1629 = sst [smem:[#allocation13_spill]] %s1070_s21  ;;  %p1226_p0 = scmp.ge.s32.totalorder %s37_s4, 3 }
  0x16   : > { %1630 = sst [smem:[#allocation14_spill]] %s1074_s22  ;;  %p66_p1 = scmp.ne.s32.totalorder %s1066_s20, %s1062_s19 }
  0x17   : > { %1631 = sst [smem:[#allocation15_spill]] %s1078_s23  ;;  %s1709_s4 = smov (%p1226_p0, %s37_s4), 0 }
  0x18   : > { %1632 = sst [smem:[#allocation16_spill]] %s1082_s24  ;;  %p1607_p2 = scmp.eq.s32.totalorder %s1102_s29, 0 }
  0x19   : > { %1633 = sst [smem:[#allocation17_spill]] %s1086_s25  ;;  %s1242_s9 = ssub.s32 %s1086_s25, %s1709_s4 }
  0x1a   : > { %1634 = sst [smem:[#allocation18_spill]] %s1094_s27  ;;  %p72_p3 = scmp.ne.s32.totalorder %s1062_s19, %s1058_s18 }
  0x1b   : > { %1636 = sst [smem:[#allocation19_spill]] %s1709_s4  ;;  %p1247_p4 = por %p1607_p2, %p66_p1 }
  0x1c   : > { %p1251_p5 = scmp.eq.s32.totalorder %s609_s30, 0  ;;  %p1255_p6 = scmp.eq.s32.totalorder %s609_s30, 23 }
  0x1d   : > { %p1606_p8 = scmp.lt.s32.totalorder %s1102_s29, 24  ;;  %s184_s18 = sand.u32 1, %s1066_s20  }
  0x1e   : > { %s1638_s11 = scalar_select %p1251_p5, 1, 0 }
  0x1f   : > { %s1639_s8 = scalar_select %p1255_p6, 1, 0 }
  0x20   : > { %p1261_p7 = por %p1251_p5, %p72_p3  ;;  %s676_s6 = smul.u32 6, %s1094_s27 }
  0x21   : > { %s613_s4 = sshll.u32 %s184_s18, 3  ;;  %s677_s23 = smul.u32 12, %s1098_s28 }
  0x22   : > { %s1640_s7 = scalar_select %p1261_p7, 1, 0 }
  0x23   : > { %s194_s3 = sadd.s32 %s1086_s25, %s676_s6  ;;  %s188_s21 = scalar_lea.vmem [#allocation2], %s613_s4 }
  0x24   : > { %1641 = sst [smem:[#allocation20_spill]] %s1640_s7  ;;  %s199_s2 = sshll.u32 %s188_s21, 4  ;;  %s1270_s2 = int_to_ptr.vmem [resolvable:$true] %s199_s2 }
  0x25   : > { %p1276_p9 = pnand %p1606_p8, %p1247_p4  ;;  %s196_s22 = sadd.s32 %s677_s23, %s194_s3 }
  0x26   : > { %s616_s24 = sshll.u32 %s196_s22, 6  ;;  %s1643_s0 = sld [smem:[#allocation26_spill]] }
  0x27   : > { %s1286_s21 = scalar_lea.sflag [#allocation3], %s184_s18  ;;  %p862_p12 = pneg %p1276_p9 }
  0x2c   : > { %s1283_s1 = scalar_lea.hbm %s1643_s0, %s616_s24  ;;  %s865_s19 = scalar_lea.hbm %s1643_s0, 1536 }
  0x2d   : > { %s860_s4 = scalar_lea.hbm %s1283_s1, 128  ;;  %p866_p3 = scmp.lt.u32.totalorder %s1283_s1, %s1643_s0 }
  0x2e   : > { %p861_p11 = scmp.ne.s32.totalorder %s1283_s1, %s860_s4  ;;  %p867_p4 = scmp.lt.u32.totalorder %s865_s19, %s860_s4 }
  0x2f   : > { %p869_p2 = scmp.lt.u32.totalorder %s860_s4, %s1283_s1 }
  0x30   : > { %p863_p13 = pnand %p862_p12, %p861_p11  ;;  %p868_p8 = por %p867_p4, %p866_p3 }
  0x32   : > { %p864_p1 = pneg %p863_p13  ;;  %p870_p10 = por %p869_p2, %p868_p8 }
  0x34   : > { %p871_p7 = pnand %p870_p10, %p864_p1 }
  0x36   : > { %874 = shalt.err (!%p871_p7)
}
  0x37   : > { %s875_s6 = scalar_lea.vmem %s1270_s2, 128  ;;  %s1104_s7 = smov [#allocation2]  }
  0x38   : > { %p876_p11 = scmp.ne.s32.totalorder %s1270_s2, %s875_s6  ;;  %s880_s10 = sshll.u32 %s1104_s7, 4  ;;  %s881_s10 = int_to_ptr.vmem [resolvable:$false] %s880_s10 }
  0x39   : > { %s882_s18 = scalar_lea.vmem %s881_s10, 256  ;;  %p883_p5 = scmp.lt.s32.totalorder %s1270_s2, %s881_s10 }
  0x3a   : > { %p878_p13 = pnand %p876_p11, %p862_p12  ;;  %p884_p3 = scmp.lt.s32.totalorder %s882_s18, %s875_s6 }
  0x3c   : > { %p879_p6 = pneg %p878_p13  ;;  %p885_p4 = por %p884_p3, %p883_p5 }
  0x3e   : > { %p886_p2 = pnand %p885_p4, %p879_p6 }
  0x40   : > { %889 = shalt.err (!%p886_p2)
}
  0x41   : > { %s1105_s4 = smov 192   ;;  %s1610_s3 = smov 64  }
  0x42   : > { %s1611_s22 = smov 4   ;;  %p242_p5 = scmp.lt.s32.totalorder %s1102_s29, 25 }
  0x43   : > { %688 = dma.hbm_to_vmem [thread:$0]  (!%p1276_p9), %s1283_s1, 128, %s1270_s2, %s1286_s21, %s1105_s4, %s1610_s3, %s1611_s22  }
  0x44   : > { %p1644_p6 = scmp.ge.s32.totalorder %s1102_s29, 1  ;;  %s610_s23 = sadd.s32 4294967294, %s1102_s29  }
  0x45   : > { %s40_s24 = sadd.s32 1, %s1090_s26  ;;  %p96_p8 = scmp.ne.s32.totalorder %s1054_s17, %s1050_s16 }
  0x46   : > { %p1319_p7 = pnand %p1644_p6, %p242_p5  ;;  %s1711_s24 = smov (!%p1226_p0, %s40_s24), %s1090_s26 }
  0x47   : > { %p42_p9 = scmp.ge.s32.totalorder %s1711_s24, 2  ;;  %p102_p10 = scmp.ne.s32.totalorder %s1050_s16, %s1046_s15 }
  0x48   : > { %p1646_p12 = scmp.eq.s32.totalorder %s1102_s29, 0  ;;  %s1649_s5 = sadd.s32 1, %s1094_s27 }
  0x49   : > { %s1713_s24 = smov (%p42_p9, %s1711_s24), 0  ;;  %s1715_s5 = smov (!%p42_p9, %s1649_s5), %s1094_s27 }
  0x4a   : > { %p1335_p1 = por %p96_p8, %p1646_p12  ;;  %1648 = sst [smem:[#allocation21_spill]] %s1713_s24 }
  0x4b   : > { %s85_s21 = ssub.s32 %s1090_s26, %s1713_s24  ;;  %p1650_p0 = scmp.ne.s32.totalorder %s1638_s11, 0 }
  0x4c   : > { %p46_p13 = scmp.ge.s32.totalorder %s1715_s5, 2  ;;  %p157_p3 = scmp.ne.s32.totalorder %s1042_s14, %s1038_s13 }
  0x4d   : > { %p1349_p11 = por %p102_p10, %p1650_p0  ;;  %p163_p4 = scmp.ne.s32.totalorder %s1038_s13, %s1034_s12 }
  0x4e   : > { %p164_p2 = scmp.eq.s32.totalorder %s610_s23, 23  ;;  %s1717_s5 = smov (%p46_p13, %s1715_s5), 0 }
  0x4f   : > { %s1651_s6 = scalar_select %p1349_p11, 1, 0 }
  0x50   : > { %1652 = sst [smem:[#allocation22_spill]] %s1717_s5  ;;  %s1653_s15 = sadd.s32 1, %s1098_s28 }
  0x51   : > { %s1719_s15 = smov (!%p46_p13, %s1653_s15), %s1098_s28  ;;  %s53_s7 = ssub.s32 %s1094_s27, %s1717_s5 }
  0x52   : > { %p1654_p5 = scmp.ne.s32.totalorder %s1639_s8, 0  ;;  %p50_p8 = scmp.ge.s32.totalorder %s1719_s15, 2 }
  0x53   : > { %p1370_p9 = por %p164_p2, %p163_p4  ;;  %s209_s18 = sand.u32 1, %s1054_s17  }
  0x54   : > { %p1366_p6 = por %p1654_p5, %p157_p3  ;;  %s645_s4 = sshll.u32 %s1086_s25, 5 }
  0x55   : > { %s1657_s10 = scalar_select %p1370_p9, 1, 0 }
  0x56   : > { %s1655_s11 = scalar_select %p1366_p6, 1, 0 }
  0x57   : > { %1658 = sst [smem:[#allocation24_spill]] %s1657_s10  ;;  %s1721_s15 = smov (%p50_p8, %s1719_s15), 0 }
  0x58   : > { %1656 = sst [smem:[#allocation23_spill]] %s1655_s11  ;;  %s617_s8 = sshll.u32 %s209_s18, 6 }
  0x59   : > { %1659 = sst [smem:[#allocation25_spill]] %s1721_s15  ;;  %s52_s23 = ssub.s32 %s1098_s28, %s1721_s15 }
  0x5a   : > { %s54_s3 = sor.u32 %s53_s7, %s52_s23  ;;  %s84_s22 = sor.u32 %s1242_s9, %s52_s23 }
  0x5b   : > { %s56_s2 = sor.u32 %s1242_s9, %s54_s3  ;;  %s86_s30 = sor.u32 %s85_s21, %s84_s22 }
  0x5c   : > { %p57_p10 = scmp.eq.s32.totalorder %s56_s2, 0  ;;  %p87_p12 = scmp.eq.s32.totalorder %s86_s30, 0 }
  0x5d   : > { %s144_s0 = sor.u32 %s85_s21, %s54_s3  ;;  %s219_s5 = sadd.s32 %s1090_s26, %s645_s4 }
  0x5e   : > { %s1660_s24 = sadd.s32 1, %s1066_s20  ;;  %s1661_s25 = sadd.s32 1, %s1054_s17 }
  0x5f   : > { %s1386_s27 = scalar_select %p57_p10, %s1066_s20, %s1660_s24  }
  0x60   : > { %s1391_s10 = scalar_select %p87_p12, %s1054_s17, %s1661_s25  }
  0x61   : > { %p145_p0 = scmp.eq.s32.totalorder %s144_s0, 0  ;;  %s678_s12 = smul.u32 96, %s1098_s28 }
  0x62   : > { %s213_s11 = scalar_lea.vmem [#allocation5], %s617_s8  ;;  %p1662_p13 = scmp.lt.s32.totalorder %s1102_s29, 24 }
  0x63   : > { %s224_s15 = sshll.u32 %s213_s11, 4  ;;  %s1664_s9 = sadd.s32 1, %s1042_s14  ;;  %s1407_s15 = int_to_ptr.vmem [resolvable:$true] %s224_s15 }
  0x64   : > { %p1398_p3 = pnand %p1662_p13, %p1335_p1  ;;  %s221_s22 = sadd.s32 %s678_s12, %s219_s5 }
  0x65   : > { %s1405_s3 = scalar_select %p145_p0, %s1042_s14, %s1664_s9  }
  0x66   : > { %s620_s25 = sshll.u32 %s221_s22, 6  ;;  %s1665_s30 = sld [smem:[#allocation27_spill]] }
  0x67   : > { %s1414_s1 = scalar_lea.sflag [#allocation6], %s209_s18  ;;  %p892_p4 = pneg %p1398_p3 }
  0x6c   : > { %s1412_s2 = scalar_lea.hbm %s1665_s30, %s620_s25  ;;  %s895_s11 = scalar_lea.hbm %s1665_s30, 12288 }
  0x6d   : > { %s890_s21 = scalar_lea.hbm %s1412_s2, 1024  ;;  %p896_p8 = scmp.lt.u32.totalorder %s1412_s2, %s1665_s30 }
  0x6e   : > { %p891_p1 = scmp.ne.s32.totalorder %s1412_s2, %s890_s21  ;;  %p897_p10 = scmp.lt.u32.totalorder %s895_s11, %s890_s21 }
  0x6f   : > { %p899_p0 = scmp.lt.u32.totalorder %s890_s21, %s1412_s2 }
  0x70   : > { %p893_p2 = pnand %p892_p4, %p891_p1  ;;  %p898_p12 = por %p897_p10, %p896_p8 }
  0x72   : > { %p894_p5 = pneg %p893_p2  ;;  %p900_p13 = por %p899_p0, %p898_p12 }
  0x74   : > { %p901_p9 = pnand %p900_p13, %p894_p5 }
  0x76   : > { %904 = shalt.err (!%p901_p9)
}
  0x77   : > { %s905_s18 = scalar_lea.vmem %s1407_s15, 1024  ;;  %s1108_s23 = smov [#allocation5]  }
  0x78   : > { %p906_p1 = scmp.ne.s32.totalorder %s1407_s15, %s905_s18  ;;  %s910_s9 = sshll.u32 %s1108_s23, 4  ;;  %s911_s9 = int_to_ptr.vmem [resolvable:$false] %s910_s9 }
  0x79   : > { %s912_s22 = scalar_lea.vmem %s911_s9, 2048  ;;  %p913_p11 = scmp.lt.s32.totalorder %s1407_s15, %s911_s9 }
  0x7a   : > { %p908_p2 = pnand %p906_p1, %p892_p4  ;;  %p914_p8 = scmp.lt.s32.totalorder %s912_s22, %s905_s18 }
  0x7c   : > { %p909_p6 = pneg %p908_p2  ;;  %p915_p10 = por %p914_p8, %p913_p11 }
  0x7e   : > { %p916_p12 = pnand %p915_p10, %p909_p6 }
  0x80   : > { %919 = shalt.err (!%p916_p12)
}
  0x81   : > { %s1109_s25 = smov 128   ;;  %s1666_s24 = smov 4  }
  0x82   : > { %s1667_s0 = smov 64   ;;  %246 = sbr.rel (%p1319_p7) target bundleno = 443 (0x1bb), region = 32 }
  0x83   : > { %691 = dma.hbm_to_vmem [thread:$0]  (!%p1398_p3), %s1412_s2, 1024, %s1407_s15, %s1414_s1, %s1109_s25, %s1667_s0, %s1666_s24  }
  0x84   : > { %s1668_s21 = sld [smem:[#allocation12_spill]] (!%p1319_p7)  ;;  %s1669_s12 = sld [smem:[#allocation20_spill]] (!%p1319_p7) }
  0x8a   : > { %s248_s5 = sand.u32 1, %s1668_s21   ;;  %p1670_p11 = scmp.ne.s32.totalorder %s1669_s12, 0 }
  0x8b   : > { %s1447_s11 = sshll.u32 %s248_s5, 3  ;;  %s249_s4 = scalar_lea.sflag [#allocation3], %s248_s5 }
  0x8c   : > { %s252_s8 = scalar_lea.vmem [#allocation2], %s1447_s11 }
  0x8d   : > { %1021 = dma.done.wait (%p1670_p11), %s249_s4, 128  }
  0x8e   : > { %1023 = vsyncadd (%p1670_p11), %s249_s4, 4294967168  ;;  %s257_s7 = sand.u32 1, %s1050_s16   ;;  %p1671_p7 = scmp.ne.s32.totalorder %s1651_s6, 0 }
  0x8f   : > { %s623_s15 = sshll.u32 %s257_s7, 6  ;;  %s258_s2 = scalar_lea.sflag [#allocation6], %s257_s7 }
  0x90   : > { %s1455_s19 = scalar_lea.vmem [#allocation5], %s623_s15 }
  0x91   : > { %1025 = dma.done.wait (%p1671_p7), %s258_s2, 1024  }
  0x92   : > { %1027 = vsyncadd (%p1671_p7), %s258_s2, 4294966272  ;;  %s1672_s1 = sld [smem:[#allocation16_spill]]  ;;  %s1673_s18 = sld [smem:[#allocation14_spill]]  ;;  %v1110_v0 = vmov 0.0   ;;  %vm1111_vm0 = vmmov 0   ;;  %v851_v1 = vld [vmem:[%s1455_s19] sm:$0xff]  }
  0x93   : > { %s293_s23 = sand.u32 1, %s1038_s13   ;;  %656 = vmatprep.subr.bf16.mxu0 %v1110_v0  ;;  %672 = vmatprep.mubr.msk.bf16.mxu0 %vm1111_vm0, %v1110_v0  ;;  %s1674_s0 = sld [smem:[#allocation28_spill]]  ;;  %v852_v2 = vld [vmem:[%s1455_s19 + $0x8] sm:$0xff]   ;;  %v853_v3 = vld [vmem:[%s1455_s19 + $0x10] sm:$0xff]   ;;  %v854_v4 = vld [vmem:[%s1455_s19 + $0x18] sm:$0xff]  }
  0x94   : > { %s1465_s9 = sshll.u32 %s293_s23, 4  ;;  %657 = vmatpush3.bf16.msra.mxu0 %v851_v1  ;;  %v855_v5 = vld [vmem:[%s1455_s19 + $0x20] sm:$0xff]   ;;  %v856_v6 = vld [vmem:[%s1455_s19 + $0x28] sm:$0xff]   ;;  %v857_v7 = vld [vmem:[%s1455_s19 + $0x30] sm:$0xff]   ;;  %s1675_s5 = sld [smem:[#allocation13_spill]] }
  0x95   : > { %658 = vmatprep.subr.bf16.mxu0 %v1110_v0  ;;  %v858_v8 = vld [vmem:[%s1455_s19 + $0x38] sm:$0xff]   ;;  %s295_s12 = scalar_lea.vmem [#allocation7], %s1465_s9 }
  0x96   : > { %v859_v9 = vld [vmem:[%s252_s8] sm:$0xff]  }
  0x98   : > { %p298_p6 = scmp.lt.s32.totalorder %s1672_s1, 1  ;;  %p300_p9 = scmp.lt.s32.totalorder %s1673_s18, 1  ;;  %659 = vmatpush3.bf16.msra.mxu0 %v852_v2 }
  0x99   : > { %660 = vmatprep.subr.bf16.mxu0 %v1110_v0 }
  0x9a   : > { %s1723_s1 = smov (!%p298_p6, %s1672_s1), 1  ;;  %s1725_s18 = smov (!%p300_p9, %s1673_s18), 1 }
  0x9b   : > { %s625_s6 = sshll.u32 %s1723_s1, 1  ;;  %p635_p3 = scmp.ne.s32.totalorder %s1675_s5, 0 }
  0x9c   : > { %s1470_s22 = sadd.s32 %s625_s6, %s1725_s18  ;;  %661 = vmatpush3.bf16.msra.mxu0 %v853_v3 }
  0x9d   : > { %s304_s21 = scalar_lea.vmem %s1674_s0, %s1470_s22  ;;  %662 = vmatprep.subr.bf16.mxu0 %v1110_v0 }
  0x9e   : > { %v636_v14 = vld [vmem:[%s304_s21] ss:$0 sm:$0xff] (!%p635_p3) }
  0xa0   : > { %663 = vmatpush3.bf16.msra.mxu0 %v854_v4 }
  0xa1   : > { %664 = vmatprep.subr.bf16.mxu0 %v1110_v0 }
  0xa4   : > { %665 = vmatpush3.bf16.msra.mxu0 %v855_v5 }
  0xa5   : > { %666 = vmatprep.subr.bf16.mxu0 %v1110_v0 }
  0xa8   : > { %667 = vmatpush3.bf16.msra.mxu0 %v856_v6 }
  0xa9   : > { %668 = vmatprep.subr.bf16.mxu0 %v1110_v0 }
  0xac   : > { %669 = vmatpush3.bf16.msra.mxu0 %v857_v7 }
  0xad   : > { %670 = vmatprep.subr.bf16.mxu0 %v1110_v0 }
  0xb0   : > { %671 = vmatpush3.bf16.msra.mxu0 %v858_v8 }
  0xb3   : > { %673 = vmatmul.mubr.bf16.vlgmr.msra.gmra.mrb[0].mxu0 %v859_v9 }
 0x183   : > { %423 = sbr.rel (%p635_p3) target bundleno = 396 (0x18c), region = 44 }
 0x186   : > { %v413_v10 = vpop.f32.mrb[0].mxu0 }
 0x187   : > { %v674_v11 = vpop.f32.mrb[1].mxu0  ;;  %v431_v15 = vadd.f32 (!%p635_p3), %v636_v14, %v413_v10 }
 0x188   : > { %v416_v12 = vpop.f32.mrb[2].mxu0 }
 0x189   : > { %v675_v13 = vpop.f32.mrb[3].mxu0  ;;  %v432_v16 = vadd.f32 (!%p635_p3), %v636_v14, %v416_v12  ;;  %433 = vst [vmem:[%s295_s12] sm:$0xff] (!%p635_p3), %v431_v15 }
 0x18b   : > { %434 = vst [vmem:[%s295_s12 + $0x8] sm:$0xff] %v432_v16 }
 0x18c PF: > { %s1677_s11 = sld [smem:[#allocation13_spill]] }
 0x192   : > { %p637_p4 = scmp.le.s32.totalorder %s1677_s11, 0 }
 0x193   : > { %v439_v17 = vld [vmem:[%s295_s12] sm:$0xff] (!%p637_p4)  ;;  %v440_v18 = vld [vmem:[%s295_s12 + $0x8] sm:$0xff] (!%p637_p4) }
 0x194   : > { %438 = sbr.rel (%p637_p4) target bundleno = 411 (0x19b), region = 48  ;;  %v441_v19 = vadd.f32 (!%p637_p4), %v439_v17, %v413_v10  ;;  %v442_v20 = vadd.f32 (!%p637_p4), %v440_v18, %v416_v12 }
 0x196   : > { %443 = vst [vmem:[%s295_s12] sm:$0xff] (!%p637_p4), %v441_v19  ;;  %444 = vst [vmem:[%s295_s12 + $0x8] sm:$0xff] (!%p637_p4), %v442_v20 }
 0x19b PF: > { %s1678_s8 = sld [smem:[#allocation15_spill]]  ;;  %s1679_s2 = sld [smem:[#allocation14_spill]] }
 0x19c   : > { %s1680_s19 = sld [smem:[#allocation16_spill]]  ;;  %s1681_s1 = sld [smem:[#allocation23_spill]] }
 0x19d   : > { %s463_s25 = sshll.u32 %s295_s12, 4  ;;  %s1682_s5 = sld [smem:[#allocation29_spill]]  ;;  %s1497_s25 = int_to_ptr.vmem [resolvable:$true] %s463_s25 }
 0x19e   : > { %s1506_s7 = scalar_lea.sflag [#allocation4], %s293_s23  ;;  %s920_s15 = scalar_lea.vmem %s1497_s25, 256 }
 0x19f   : > { %p921_p5 = scmp.ne.s32.totalorder %s1497_s25, %s920_s15  ;;  %s1112_s12 = smov [#allocation7]  }
 0x1a0   : > { %s924_s11 = sshll.u32 %s1112_s12, 4  ;;  %s925_s11 = int_to_ptr.vmem [resolvable:$false] %s924_s11 }
 0x1a1   : > { %s646_s18 = sshll.u32 %s1678_s8, 2  ;;  %s926_s8 = scalar_lea.vmem %s925_s11, 512 }
 0x1a2   : > { %s458_s9 = sadd.s32 %s1679_s2, %s646_s18  ;;  %s641_s6 = sshll.u32 %s1680_s19, 3 }
 0x1a3   : > { %s460_s22 = sadd.s32 %s641_s6, %s458_s9  ;;  %p1683_p0 = scmp.ne.s32.totalorder %s1681_s1, 0 }
 0x1a4   : > { %s642_s24 = sshll.u32 %s460_s22, 7  ;;  %p927_p2 = scmp.lt.s32.totalorder %s1497_s25, %s925_s11 }
 0x1a5   : > { %s1502_s4 = scalar_lea.hbm %s1682_s5, %s642_s24  ;;  %p922_p13 = pnand %p921_p5, %p1683_p0 }
 0x1a6   : > { %p928_p8 = scmp.lt.s32.totalorder %s926_s8, %s920_s15 }
 0x1a7   : > { %p923_p1 = pneg %p922_p13 }
 0x1a8   : > { %p929_p10 = por %p928_p8, %p927_p2 }
 0x1aa   : > { %p930_p12 = pnand %p929_p10, %p923_p1 }
 0x1ac   : > { %933 = shalt.err (!%p930_p12)
}
 0x1ad   : > { %s934_s23 = scalar_lea.hbm %s1502_s4, 256  ;;  %s938_s18 = scalar_lea.hbm %s1682_s5, 2048 }
 0x1ae   : > { %p935_p11 = scmp.ne.s32.totalorder %s1502_s4, %s934_s23  ;;  %p939_p9 = scmp.lt.u32.totalorder %s1502_s4, %s1682_s5 }
 0x1af   : > { %p940_p3 = scmp.lt.u32.totalorder %s938_s18, %s934_s23  ;;  %p942_p5 = scmp.lt.u32.totalorder %s934_s23, %s1502_s4 }
 0x1b0   : > { %p936_p7 = pnand %p935_p11, %p1683_p0 }
 0x1b1   : > { %p941_p4 = por %p940_p3, %p939_p9 }
 0x1b2   : > { %p937_p6 = pneg %p936_p7 }
 0x1b3   : > { %p943_p13 = por %p942_p5, %p941_p4 }
 0x1b5   : > { %p944_p1 = pnand %p943_p13, %p937_p6 }
 0x1b7   : > { %947 = shalt.err (!%p944_p1)
}
 0x1b8   : > { %s1113_s22 = smov 128   ;;  %s1114_s24 = smov 256  }
 0x1b9   : > { %s1115_s0 = smov 8  }
 0x1ba   : > { %683 = dma.vmem_to_hbm [thread:$0]  (%p1683_p0), %s1497_s25, 256, %s1502_s4, %s1506_s7, %s1113_s22, %s1114_s24, %s1115_s0  }
 0x1bb PF: > { %s1684_s21 = sld [smem:[#allocation11_spill]]  ;;  %s1685_s15 = sld [smem:[#allocation24_spill]] }
 0x1bc   : > { %p697_p2 = scmp.ge.s32.totalorder %s1102_s29, 2 }
 0x1c1   : > { %s478_s12 = sand.u32 1, %s1684_s21   ;;  %p1686_p8 = scmp.ne.s32.totalorder %s1685_s15, 0 }
 0x1c2   : > { %s479_s11 = scalar_lea.sflag [#allocation4], %s478_s12 }
 0x1c3   : > { %p693_p10 = pnand %p697_p2, %p1686_p8 }
 0x1c5   : > { %1029 = dma.done.wait (!%p693_p10), %s479_s11, 256  }
 0x1c6   : > { %1031 = vsyncadd (!%p693_p10), %s479_s11, 4294967040  ;;  %s22_s29 = sadd.s32 1, %s1102_s29   ;;  %s1688_s18 = sld [smem:[#allocation12_spill]] }
 0x1c7   : > { %p1535_p12 = scmp.ge.s32.totalorder %s22_s29, 26   ;;  %s1689_s21 = sld [smem:[#allocation17_spill]] }
 0x1c8   : > { %s1690_s23 = sld [smem:[#allocation18_spill]]  ;;  %s1691_s25 = sld [smem:[#allocation19_spill]] }
 0x1c9   : > { %s1692_s1 = sld [smem:[#allocation21_spill]]  ;;  %s1693_s4 = sld [smem:[#allocation22_spill]] }
 0x1ca   : > { %s1694_s12 = smov %s1038_s13  ;;  %s1695_s7 = sld [smem:[#allocation25_spill]] }
 0x1cb   : > { %s1696_s13 = smov %s1042_s14  ;;  %s1697_s14 = smov %s1405_s3 }
 0x1cc   : > { %s1698_s15 = smov %s1050_s16  ;;  %s1699_s16 = smov %s1054_s17 }
 0x1cd   : > { %s1700_s17 = smov %s1391_s10  ;;  %s1701_s19 = smov %s1066_s20 }
 0x1ce   : > { %s1702_s20 = smov %s1386_s27  ;;  %s1703_s22 = smov %s1090_s26 }
 0x1cf   : > { %s1704_s24 = smov %s1098_s28  ;;  %s1705_s26 = smov %s1692_s1 }
 0x1d0   : > { %s1706_s27 = smov %s1693_s4  ;;  %s1707_s28 = smov %s1695_s7 }
 0x1d1   :  { %21 = sbr.rel (!%p1535_p12) target bundleno = 19 (0x13), region = 101 }
 0x1d8   :  { %484 = vsyncpa [#allocation3], 1 }
 0x1d9   :  { %486 = vsyncpa [#allocation3 + $0x1], 1 }
 0x1da   :  { %487 = vsyncpa [#allocation6], 1 }
 0x1db   :  { %489 = vsyncpa [#allocation6 + $0x1], 1 }
 0x1dc   :  { %490 = vsyncpa [#allocation4], 1 }
 0x1dd   :  { %492 = vsyncpa [#allocation4 + $0x1], 1 }

</bundles_post_ra>
